<compile_context>
chip_gen: v5e
topology: v5e:2x2
jax: 0.10.0
libtpu: 0.0.40
codegen_flags: <defaults>
</compile_context>

<pallas_src>
import math
from functools import partial

import jax
import jax.numpy as jnp
from jax import lax
from jax.experimental import pallas as pl
from jax.experimental.pallas import tpu as pltpu

# ---- model hyperparameters (from the module __init__) ----------------------
MAX_LEN = 10
VOCAB_SIZE = 3
HIDDEN = 64
D_IN = VOCAB_SIZE + 1            # key_val_dense input dim = 4
Q_LEN = VOCAB_SIZE + 1           # self.query shape (1, vocab_size+1, hidden)
D_OUT = MAX_LEN + 1              # final linear output dim = 11
LN_EPS = 1e-5
SELF_ATT = False                 # module default (self_att=False)

LANE = 128


def _round_up(x, m):
    return ((x + m - 1) // m) * m


def _batch_block(batch, max_bb=8):
    """Largest divisor of `batch` that is <= max_bb (keeps blocks exact)."""
    bb = min(batch, max_bb)
    while batch % bb:
        bb -= 1
    return bb


def _softmax_last(x):
    # softmax over the last axis (matches F.softmax(..., dim=2))
    m = jnp.max(x, axis=-1, keepdims=True)
    e = jnp.exp(x - m)
    return e / jnp.sum(e, axis=-1, keepdims=True)


def _layernorm(x, gamma, beta):
    # LayerNorm over the last axis, biased variance, eps=1e-5 (PyTorch default)
    mean = jnp.mean(x, axis=-1, keepdims=True)
    var = jnp.mean(jnp.square(x - mean), axis=-1, keepdims=True)
    inv = lax.rsqrt(var + LN_EPS)
    return (x - mean) * inv * gamma + beta


def _attn_kernel(x_ref, q_ref, qs_ref, wkv_ref, bkv_ref, g_ref, b_ref,
                 wo_ref, bo_ref, out_ref, *, attw_off):
    # x_ref:   (Bb, S, D_IN)   block of batches
    # q_ref:   (Q_LEN, HIDDEN) learned query (residual branch)
    # qs_ref:  (Q_LEN, HIDDEN) query pre-scaled by 1/sqrt(HIDDEN) (scores branch)
    # wkv_ref: (D_IN, HIDDEN), bkv_ref: (1, HIDDEN)
    # g_ref/b_ref: (1, HIDDEN) LayerNorm gamma/beta
    # wo_ref:  (HIDDEN, D_OUT), bo_ref: (1, D_OUT)
    # out_ref: (Bb, Q_LEN, slab_w) lane-dense packed output
    bb, seq, _ = x_ref.shape
    slab_w = out_ref.shape[-1]
    rows = bb * Q_LEN

    # key_val = Linear(x): one tall matmul for the whole batch block
    x = x_ref[...].reshape(bb * seq, D_IN)
    kv = (jnp.dot(x, wkv_ref[...], preferred_element_type=jnp.float32)
          + bkv_ref[...]).reshape(bb, seq, HIDDEN)

    # scaled dot-product attention (query, key_val, key_val), no mask.
    # Contract on the last (lane) axis of BOTH operands -> no kv transpose.
    qb = jnp.broadcast_to(qs_ref[...].reshape(1, Q_LEN, HIDDEN),
                          (bb, Q_LEN, HIDDEN))
    scores = lax.dot_general(qb, kv, (((2,), (2,)), ((0,), (0,))),
                             preferred_element_type=jnp.float32)    # (Bb,Q,S)
    attw = _softmax_last(scores)                                     # (Bb,Q,S)
    att = lax.dot_general(attw, kv, (((2,), (1,)), ((0,), (0,))),
                          preferred_element_type=jnp.float32)        # (Bb,Q,H)

    # add & norm (query broadcasts over the batch block)
    q = q_ref[...].reshape(1, Q_LEN, HIDDEN)
    h = _layernorm(att + q, g_ref[...], b_ref[...])                  # (Bb,Q,H)

    if SELF_ATT:
        # second (self) attention on decoding_pre
        # TODO(synk): self-attention weights are not returned (module default
        # self_att=False); wire out a second slab region if ever needed.
        hs = h * (1.0 / math.sqrt(float(HIDDEN)))
        s2 = lax.dot_general(hs, h, (((2,), (2,)), ((0,), (0,))),
                             preferred_element_type=jnp.float32)
        a2 = _softmax_last(s2)
        att2 = lax.dot_general(a2, h, (((2,), (1,)), ((0,), (0,))),
                               preferred_element_type=jnp.float32)
        h = _layernorm(att2 + q, g_ref[...], b_ref[...])

    # final linear: one matmul for the whole block
    out = (jnp.dot(h.reshape(rows, HIDDEN), wo_ref[...],
                   preferred_element_type=jnp.float32)
           + bo_ref[...])                                            # (rows, D_OUT)

    # pack logits (lanes [0:D_OUT]) and attention weights (lanes
    # [attw_off:attw_off+S]) into a single lane-dense slab -> one unmasked
    # full-width store.
    attw_flat = attw.reshape(rows, seq)
    pieces = [out]
    if attw_off > D_OUT:
        pieces.append(jnp.zeros((rows, attw_off - D_OUT), jnp.float32))
    pieces.append(attw_flat)
    pad_r = slab_w - attw_off - seq
    if pad_r > 0:
        pieces.append(jnp.zeros((rows, pad_r), jnp.float32))
    slab = jnp.concatenate(pieces, axis=-1)                          # (rows, slab_w)

    out_ref[...] = slab.reshape(bb, Q_LEN, slab_w)


def self_attention_forward(x, params):
    """x: (B, S, D_IN) float32 -> (logits (B,Q,11), enc_attn (B,Q,S), None)"""
    B, S, d_in = x.shape
    assert d_in == D_IN
    q, wkv, bkv, gamma, beta, wo, bo = params

    # fold the 1/sqrt(d_k) attention scale into the query at trace time
    q_scaled = q * (1.0 / math.sqrt(float(HIDDEN)))

    # collapse the batch grid: blocks of up to 8 batches per grid step
    Bb = _batch_block(B)
    grid = (B // Bb,)

    # lane-dense packed output: logits in [0:D_OUT], attn weights in
    # [attw_off:attw_off+S]; slab width is a multiple of 128 lanes.
    attw_off = _round_up(D_OUT, 16)
    slab_w = _round_up(max(LANE, attw_off + S), LANE)

    full = lambda shape: pl.BlockSpec(shape, lambda i: (0,) * len(shape))

    slab = pl.pallas_call(
        partial(_attn_kernel, attw_off=attw_off),
        out_shape=jax.ShapeDtypeStruct((B, Q_LEN, slab_w), jnp.float32),
        grid_spec=pltpu.PrefetchScalarGridSpec(
            num_scalar_prefetch=0,
            grid=grid,
            in_specs=[
                pl.BlockSpec((Bb, S, D_IN), lambda i: (i, 0, 0)),  # x block
                full((Q_LEN, HIDDEN)),                             # query
                full((Q_LEN, HIDDEN)),                             # query (scaled)
                full((D_IN, HIDDEN)),                              # W_kv
                full((1, HIDDEN)),                                 # b_kv
                full((1, HIDDEN)),                                 # ln gamma
                full((1, HIDDEN)),                                 # ln beta
                full((HIDDEN, D_OUT)),                             # W_out
                full((1, D_OUT)),                                  # b_out
            ],
            out_specs=pl.BlockSpec((Bb, Q_LEN, slab_w), lambda i: (i, 0, 0)),
        ),
        compiler_params=pltpu.CompilerParams(
            dimension_semantics=("parallel",)),
    )(x, q, q_scaled, wkv, bkv, gamma, beta, wo, bo)

    logits = slab[:, :, :D_OUT]
    attw = slab[:, :, attw_off:attw_off + S]
    self_attention_weights = None  # self_att=False path
    return logits, attw, self_attention_weights


def init_params(key):
    """Parameter init matching the module's shapes (query is zeros in the
    original __init__; Linear weights use PyTorch-style uniform limits,
    LayerNorm weights use standard values)."""
    k1, k2, k3, k4 = jax.random.split(key, 4)
    q = jnp.zeros((Q_LEN, HIDDEN), jnp.float32)          # query (1,4,64) squeezed
    lim_kv = 1.0 / math.sqrt(D_IN)
    wkv = jax.random.uniform(k1, (D_IN, HIDDEN), jnp.float32, -lim_kv, lim_kv)
    bkv = jax.random.uniform(k2, (1, HIDDEN), jnp.float32, -lim_kv, lim_kv)
    gamma = jnp.ones((1, HIDDEN), jnp.float32)
    beta = jnp.zeros((1, HIDDEN), jnp.float32)
    lim_o = 1.0 / math.sqrt(HIDDEN)
    wo = jax.random.uniform(k3, (HIDDEN, D_OUT), jnp.float32, -lim_o, lim_o)
    bo = jax.random.uniform(k4, (1, D_OUT), jnp.float32, -lim_o, lim_o)
    return (q, wkv, bkv, gamma, beta, wo, bo)


if __name__ == "__main__":
    key = jax.random.PRNGKey(0)
    kx, kp, kq = jax.random.split(key, 3)

    B, S = 2, 8
    x = jax.random.normal(kx, (B, S, D_IN), jnp.float32)  # (batch, seq, vocab_size+1)
    params = init_params(kp)
    # The PyTorch module initializes query to zeros; use small random values
    # here so the attention path is actually exercised by the check.
    params = (0.1 * jax.random.normal(kq, (Q_LEN, HIDDEN), jnp.float32),) + params[1:]

    logits, enc_attn, self_attn = self_attention_forward(x, params)
    jax.block_until_ready((logits, enc_attn))

    assert logits.shape == (B, Q_LEN, D_OUT)
    assert enc_attn.shape == (B, Q_LEN, S)
    assert self_attn is None

    # sanity check against a pure-JAX reference
    def ref_forward(x, params):
        q, wkv, bkv, gamma, beta, wo, bo = params
        kv = x @ wkv + bkv[0]
        scores = jnp.einsum("qh,bsh->bqs", q, kv) / math.sqrt(HIDDEN)
        attw = jax.nn.softmax(scores, axis=-1)
        att = jnp.einsum("bqs,bsh->bqh", attw, kv)
        h = att + q
        mean = h.mean(-1, keepdims=True)
        var = ((h - mean) ** 2).mean(-1, keepdims=True)
        h = (h - mean) / jnp.sqrt(var + LN_EPS) * gamma[0] + beta[0]
        return h @ wo + bo[0], attw

    ref_logits, ref_attw = ref_forward(x, params)
    assert jnp.allclose(logits, ref_logits, atol=1e-4, rtol=1e-4)
    assert jnp.allclose(enc_attn, ref_attw, atol=1e-5, rtol=1e-5)

    print("KERNEL_OK")
</pallas_src>

<mosaic_0001>
module attributes {stable_mosaic.version = 11 : i64} {
  func.func @_attn_kernel(%arg0: i32, %arg1: memref<2x8x4xf32, #tpu.memory_space<vmem>>, %arg2: memref<4x64xf32, #tpu.memory_space<vmem>>, %arg3: memref<4x64xf32, #tpu.memory_space<vmem>>, %arg4: memref<4x64xf32, #tpu.memory_space<vmem>>, %arg5: memref<1x64xf32, #tpu.memory_space<vmem>>, %arg6: memref<1x64xf32, #tpu.memory_space<vmem>>, %arg7: memref<1x64xf32, #tpu.memory_space<vmem>>, %arg8: memref<64x11xf32, #tpu.memory_space<vmem>>, %arg9: memref<1x11xf32, #tpu.memory_space<vmem>>, %arg10: memref<2x4x128xf32, #tpu.memory_space<vmem>>) attributes {dimension_semantics = [#tpu.dimension_semantics<parallel>], iteration_bounds = array<i64: 1>, scalar_prefetch = 0 : i64, scratch_operands = 0 : i64, tpu.core_type = #tpu.core_type<tc>, window_params = [{transform_indices = @transform_0, window_bounds = array<i64: 2, 8, 4>}, {pipeline_mode = #tpu.pipeline_mode<synchronous>, transform_indices = @transform_1, window_bounds = array<i64: 4, 64>}, {pipeline_mode = #tpu.pipeline_mode<synchronous>, transform_indices = @transform_2, window_bounds = array<i64: 4, 64>}, {pipeline_mode = #tpu.pipeline_mode<synchronous>, transform_indices = @transform_3, window_bounds = array<i64: 4, 64>}, {pipeline_mode = #tpu.pipeline_mode<synchronous>, transform_indices = @transform_4, window_bounds = array<i64: 1, 64>}, {pipeline_mode = #tpu.pipeline_mode<synchronous>, transform_indices = @transform_5, window_bounds = array<i64: 1, 64>}, {pipeline_mode = #tpu.pipeline_mode<synchronous>, transform_indices = @transform_6, window_bounds = array<i64: 1, 64>}, {pipeline_mode = #tpu.pipeline_mode<synchronous>, transform_indices = @transform_7, window_bounds = array<i64: 64, 11>}, {pipeline_mode = #tpu.pipeline_mode<synchronous>, transform_indices = @transform_8, window_bounds = array<i64: 1, 11>}, {transform_indices = @transform_9, window_bounds = array<i64: 2, 4, 128>}]} {
    %c0 = arith.constant 0 : index
    %c0_0 = arith.constant 0 : index
    %c0_1 = arith.constant 0 : index
    %0 = vector.load %arg1[%c0, %c0_0, %c0_1] : memref<2x8x4xf32, #tpu.memory_space<vmem>>, vector<2x8x4xf32>
    %1 = vector.shape_cast %0 : vector<2x8x4xf32> to vector<16x4xf32>
    %c0_2 = arith.constant 0 : index
    %c0_3 = arith.constant 0 : index
    %2 = vector.load %arg4[%c0_2, %c0_3] : memref<4x64xf32, #tpu.memory_space<vmem>>, vector<4x64xf32>
    %cst = arith.constant dense<0.000000e+00> : vector<16x64xf32>
    %3 = tpu.matmul %1, %2, %cst {dimension_numbers = #tpu.dot_dimension_numbers<[1], [0], [0], [1], [0, 0, 1, 1], [], []>} : vector<16x4xf32>, vector<4x64xf32>, vector<16x64xf32> -> vector<16x64xf32>
    %c0_4 = arith.constant 0 : index
    %c0_5 = arith.constant 0 : index
    %4 = vector.load %arg5[%c0_4, %c0_5] : memref<1x64xf32, #tpu.memory_space<vmem>>, vector<1x64xf32>
    %5 = vector.broadcast %4 : vector<1x64xf32> to vector<16x64xf32>
    %6 = arith.addf %3, %5 : vector<16x64xf32>
    %7 = vector.shape_cast %6 : vector<16x64xf32> to vector<2x8x64xf32>
    %c0_6 = arith.constant 0 : index
    %c0_7 = arith.constant 0 : index
    %8 = vector.load %arg3[%c0_6, %c0_7] : memref<4x64xf32, #tpu.memory_space<vmem>>, vector<4x64xf32>
    %9 = vector.shape_cast %8 : vector<4x64xf32> to vector<1x4x64xf32>
    %10 = vector.shape_cast %9 : vector<1x4x64xf32> to vector<1x4x64xf32>
    %11 = vector.broadcast %10 : vector<1x4x64xf32> to vector<2x4x64xf32>
    %cst_8 = arith.constant dense<0.000000e+00> : vector<2x4x8xf32>
    %12 = tpu.matmul %11, %7, %cst_8 {dimension_numbers = #tpu.dot_dimension_numbers<[2], [2], [1], [1], [0, 0, 0, 1, 1, 1], [0], [0]>} : vector<2x4x64xf32>, vector<2x8x64xf32>, vector<2x4x8xf32> -> vector<2x4x8xf32>
    %cst_9 = arith.constant dense<0xFF800000> : vector<2x4xf32>
    %13 = vector.multi_reduction <maximumf>, %12, %cst_9 [2] : vector<2x4x8xf32> to vector<2x4xf32>
    %14 = vector.shape_cast %13 : vector<2x4xf32> to vector<2x4x1xf32>
    %15 = vector.broadcast %14 : vector<2x4x1xf32> to vector<2x4x8xf32>
    %16 = arith.subf %12, %15 : vector<2x4x8xf32>
    %17 = math.exp %16 : vector<2x4x8xf32>
    %cst_10 = arith.constant dense<0.000000e+00> : vector<2x4xf32>
    %18 = vector.multi_reduction <add>, %17, %cst_10 [2] : vector<2x4x8xf32> to vector<2x4xf32>
    %19 = vector.shape_cast %18 : vector<2x4xf32> to vector<2x4x1xf32>
    %20 = vector.broadcast %19 : vector<2x4x1xf32> to vector<2x4x8xf32>
    %21 = arith.divf %17, %20 : vector<2x4x8xf32>
    %cst_11 = arith.constant dense<0.000000e+00> : vector<2x4x64xf32>
    %22 = tpu.matmul %21, %7, %cst_11 {dimension_numbers = #tpu.dot_dimension_numbers<[2], [1], [1], [2], [0, 0, 0, 1, 1, 2], [0], [0]>} : vector<2x4x8xf32>, vector<2x8x64xf32>, vector<2x4x64xf32> -> vector<2x4x64xf32>
    %c0_12 = arith.constant 0 : index
    %c0_13 = arith.constant 0 : index
    %23 = vector.load %arg2[%c0_12, %c0_13] : memref<4x64xf32, #tpu.memory_space<vmem>>, vector<4x64xf32>
    %24 = vector.shape_cast %23 : vector<4x64xf32> to vector<1x4x64xf32>
    %25 = vector.broadcast %24 : vector<1x4x64xf32> to vector<2x4x64xf32>
    %26 = arith.addf %22, %25 : vector<2x4x64xf32>
    %c0_14 = arith.constant 0 : index
    %c0_15 = arith.constant 0 : index
    %27 = vector.load %arg6[%c0_14, %c0_15] : memref<1x64xf32, #tpu.memory_space<vmem>>, vector<1x64xf32>
    %c0_16 = arith.constant 0 : index
    %c0_17 = arith.constant 0 : index
    %28 = vector.load %arg7[%c0_16, %c0_17] : memref<1x64xf32, #tpu.memory_space<vmem>>, vector<1x64xf32>
    %cst_18 = arith.constant dense<0.000000e+00> : vector<2x4xf32>
    %29 = vector.multi_reduction <add>, %26, %cst_18 [2] : vector<2x4x64xf32> to vector<2x4xf32>
    %30 = vector.shape_cast %29 : vector<2x4xf32> to vector<2x4x1xf32>
    %cst_19 = arith.constant 6.400000e+01 : f32
    %31 = vector.broadcast %cst_19 : f32 to vector<2x4x1xf32>
    %32 = arith.divf %30, %31 : vector<2x4x1xf32>
    %33 = vector.broadcast %32 : vector<2x4x1xf32> to vector<2x4x64xf32>
    %34 = arith.subf %26, %33 : vector<2x4x64xf32>
    %35 = arith.mulf %34, %34 : vector<2x4x64xf32>
    %cst_20 = arith.constant dense<0.000000e+00> : vector<2x4xf32>
    %36 = vector.multi_reduction <add>, %35, %cst_20 [2] : vector<2x4x64xf32> to vector<2x4xf32>
    %37 = vector.shape_cast %36 : vector<2x4xf32> to vector<2x4x1xf32>
    %cst_21 = arith.constant 6.400000e+01 : f32
    %38 = vector.broadcast %cst_21 : f32 to vector<2x4x1xf32>
    %39 = arith.divf %37, %38 : vector<2x4x1xf32>
    %cst_22 = arith.constant 9.99999974E-6 : f32
    %40 = vector.broadcast %cst_22 : f32 to vector<2x4x1xf32>
    %41 = arith.addf %39, %40 : vector<2x4x1xf32>
    %42 = math.rsqrt %41 : vector<2x4x1xf32>
    %43 = vector.broadcast %32 : vector<2x4x1xf32> to vector<2x4x64xf32>
    %44 = arith.subf %26, %43 : vector<2x4x64xf32>
    %45 = vector.broadcast %42 : vector<2x4x1xf32> to vector<2x4x64xf32>
    %46 = arith.mulf %44, %45 : vector<2x4x64xf32>
    %47 = vector.shape_cast %27 : vector<1x64xf32> to vector<1x1x64xf32>
    %48 = vector.broadcast %47 : vector<1x1x64xf32> to vector<2x4x64xf32>
    %49 = arith.mulf %46, %48 : vector<2x4x64xf32>
    %50 = vector.shape_cast %28 : vector<1x64xf32> to vector<1x1x64xf32>
    %51 = vector.broadcast %50 : vector<1x1x64xf32> to vector<2x4x64xf32>
    %52 = arith.addf %49, %51 : vector<2x4x64xf32>
    %53 = vector.shape_cast %52 : vector<2x4x64xf32> to vector<8x64xf32>
    %c0_23 = arith.constant 0 : index
    %c0_24 = arith.constant 0 : index
    %54 = vector.load %arg8[%c0_23, %c0_24] : memref<64x11xf32, #tpu.memory_space<vmem>>, vector<64x11xf32>
    %cst_25 = arith.constant dense<0.000000e+00> : vector<8x11xf32>
    %55 = tpu.matmul %53, %54, %cst_25 {dimension_numbers = #tpu.dot_dimension_numbers<[1], [0], [0], [1], [0, 0, 1, 1], [], []>} : vector<8x64xf32>, vector<64x11xf32>, vector<8x11xf32> -> vector<8x11xf32>
    %c0_26 = arith.constant 0 : index
    %c0_27 = arith.constant 0 : index
    %56 = vector.load %arg9[%c0_26, %c0_27] : memref<1x11xf32, #tpu.memory_space<vmem>>, vector<1x11xf32>
    %57 = vector.broadcast %56 : vector<1x11xf32> to vector<8x11xf32>
    %58 = arith.addf %55, %57 : vector<8x11xf32>
    %59 = vector.shape_cast %21 : vector<2x4x8xf32> to vector<8x8xf32>
    %cst_28 = arith.constant 0.000000e+00 : f32
    %60 = vector.broadcast %cst_28 : f32 to vector<8x5xf32>
    %cst_29 = arith.constant 0.000000e+00 : f32
    %61 = vector.broadcast %cst_29 : f32 to vector<8x104xf32>
    %62 = tpu.concatenate %58, %60, %59, %61 in 1 : vector<8x11xf32>, vector<8x5xf32>, vector<8x8xf32>, vector<8x104xf32> -> vector<8x128xf32>
    %63 = vector.shape_cast %62 : vector<8x128xf32> to vector<2x4x128xf32>
    %c0_30 = arith.constant 0 : index
    %c0_31 = arith.constant 0 : index
    %c0_32 = arith.constant 0 : index
    %64 = vector.load %arg10[%c0_30, %c0_31, %c0_32] : memref<2x4x128xf32, #tpu.memory_space<vmem>>, vector<2x4x128xf32>
    tpu.vector_store %arg10[%c0_30, %c0_31, %c0_32], %63 {strides = array<i32>} : memref<2x4x128xf32, #tpu.memory_space<vmem>>, vector<2x4x128xf32>,
    return
  }
  func.func @transform_0(%arg0: i32) -> (i32, i32, i32) {
    %c0_i32 = arith.constant 0 : i32
    %c0_i32_0 = arith.constant 0 : i32
    %c0_i32_1 = arith.constant 0 : i32
    return %arg0, %c0_i32, %c0_i32_0 : i32, i32, i32
  }
  func.func @transform_1(%arg0: i32) -> (i32, i32) {
    %c0_i32 = arith.constant 0 : i32
    %c0_i32_0 = arith.constant 0 : i32
    %c0_i32_1 = arith.constant 0 : i32
    return %c0_i32, %c0_i32_0 : i32, i32
  }
  func.func @transform_2(%arg0: i32) -> (i32, i32) {
    %c0_i32 = arith.constant 0 : i32
    %c0_i32_0 = arith.constant 0 : i32
    %c0_i32_1 = arith.constant 0 : i32
    return %c0_i32, %c0_i32_0 : i32, i32
  }
  func.func @transform_3(%arg0: i32) -> (i32, i32) {
    %c0_i32 = arith.constant 0 : i32
    %c0_i32_0 = arith.constant 0 : i32
    %c0_i32_1 = arith.constant 0 : i32
    return %c0_i32, %c0_i32_0 : i32, i32
  }
  func.func @transform_4(%arg0: i32) -> (i32, i32) {
    %c0_i32 = arith.constant 0 : i32
    %c0_i32_0 = arith.constant 0 : i32
    %c0_i32_1 = arith.constant 0 : i32
    return %c0_i32, %c0_i32_0 : i32, i32
  }
  func.func @transform_5(%arg0: i32) -> (i32, i32) {
    %c0_i32 = arith.constant 0 : i32
    %c0_i32_0 = arith.constant 0 : i32
    %c0_i32_1 = arith.constant 0 : i32
    return %c0_i32, %c0_i32_0 : i32, i32
  }
  func.func @transform_6(%arg0: i32) -> (i32, i32) {
    %c0_i32 = arith.constant 0 : i32
    %c0_i32_0 = arith.constant 0 : i32
    %c0_i32_1 = arith.constant 0 : i32
    return %c0_i32, %c0_i32_0 : i32, i32
  }
  func.func @transform_7(%arg0: i32) -> (i32, i32) {
    %c0_i32 = arith.constant 0 : i32
    %c0_i32_0 = arith.constant 0 : i32
    %c0_i32_1 = arith.constant 0 : i32
    return %c0_i32, %c0_i32_0 : i32, i32
  }
  func.func @transform_8(%arg0: i32) -> (i32, i32) {
    %c0_i32 = arith.constant 0 : i32
    %c0_i32_0 = arith.constant 0 : i32
    %c0_i32_1 = arith.constant 0 : i32
    return %c0_i32, %c0_i32_0 : i32, i32
  }
  func.func @transform_9(%arg0: i32) -> (i32, i32, i32) {
    %c0_i32 = arith.constant 0 : i32
    %c0_i32_0 = arith.constant 0 : i32
    %c0_i32_1 = arith.constant 0 : i32
    return %arg0, %c0_i32, %c0_i32_0 : i32, i32, i32
  }
}

</mosaic_0001>

<bundles_post_ra>
// kernel: tpu_custom_call.1
= control target key start
LH: loop header
LB: loop body
LE: loop exit
PB: predicated region body
PF: predicated region fallthrough
CT: control target
= control target key end

     0   :  { %vm47_vm0 = vcmask 1043456   ;;  %vm40_vm1 = vcmask 31744   ;;  %s553_s0 = inlined_call_operand.vmem [shape: f32[2,8,4], index: 0, kind: input, shape index: {}]   ;;  %s554_s1 = inlined_call_operand.vmem [shape: f32[4,64], index: 1, kind: input, shape index: {}]   ;;  %s555_s2 = inlined_call_operand.vmem [shape: f32[4,64], index: 2, kind: input, shape index: {}]   ;;  %s556_s3 = inlined_call_operand.vmem [shape: f32[4,64], index: 3, kind: input, shape index: {}]   ;;  %s557_s4 = inlined_call_operand.vmem [shape: f32[1,64], index: 4, kind: input, shape index: {}]   ;;  %s558_s5 = inlined_call_operand.vmem [shape: f32[1,64], index: 5, kind: input, shape index: {}]   ;;  %s559_s6 = inlined_call_operand.vmem [shape: f32[1,64], index: 6, kind: input, shape index: {}]   ;;  %s560_s7 = inlined_call_operand.vmem [shape: f32[64,11], index: 7, kind: input, shape index: {}]   ;;  %s561_s8 = inlined_call_operand.vmem [shape: f32[1,11], index: 8, kind: input, shape index: {}]   ;;  %s562_s9 = inlined_call_operand.hbm [shape: f32[2,4,128], index: 9, kind: output, shape index: {}]  }
   0x1   :  { %v35_v0 = vld [vmem:[%s556_s3] sm:$0xf] }
   0x2   :  { %v33_v1 = vld [vmem:[%s553_s0] sm:$0xff]  ;;  %362 = vmatpush.msk.msra.mxu0 %vm47_vm0, %v35_v0 }
   0x3   :  { %363 = vmatmul.msk.f32.vlgmr.msra.gmra.mxu0 %vm40_vm1, %v33_v1 }
   0x4   :  { %14 = vsyncpa [#allocation3], 0  ;;  %v34_v2 = vld [vmem:[%s553_s0 + $0x8] sm:$0xff]  ;;  %v377_v3 = vld [vmem:[%s557_s4] ss:$0 sm:$0xff]  ;;  %vm75_vm2 = vcmask 523264  }
   0x5   :  { %v74_v6 = vld [vmem:[%s555_s2] sm:$0xf]  ;;  %vm125_vm3 = vcmask 60416   ;;  %vm175_vm8 = vcmask 64512   ;;  %vm224_vm13 = vcmask 519168   ;;  %v421_v54 = vmov 64.0  }
   0x6   :  { %v174_v47 = vld [vmem:[%s554_s1] sm:$0xf]  ;;  %s423_s15 = smov [#allocation2]   ;;  %s350_s0 = sshll.u32 %s562_s9, 4  ;;  %s351_s0 = int_to_ptr.hbm [resolvable:$true] %s350_s0 }
   0x7   :  { %s348_s16 = sshll.u32 %s423_s15, 4  ;;  %s425_s2 = smov 4   ;;  %s349_s16 = int_to_ptr.vmem [resolvable:$true] %s348_s16 }
   0xb   :  { %364 = vmatmul.msk.f32.gmra.mxu0 %vm40_vm1, %v34_v2 }
  0x80   :  { %v68_v4 = vpop.f32.mrf.mxu0 }
  0x81   :  { %v69_v5 = vadd.f32 %v377_v3, %v68_v4 }
  0x83   :  { %365 = vmatpush.xpose.msk.msra.mxu1 %vm75_vm2, %v69_v5  ;;  %194 = vmatpush.msra.mxu3 %v69_v5 }
  0x86   :  { %366 = vmatmul.msk.f32.vlgmr.msra.gmra.mxu1 %vm75_vm2, %v74_v6 }
  0x88   :  { %v71_v7 = vpop.f32.mrf.mxu0 }
  0x89   :  { %v72_v8 = vadd.f32 %v377_v3, %v71_v7 }
  0x8b   :  { %367 = vmatpush.xpose.msk.msra.mxu2 %vm75_vm2, %v72_v8  ;;  %217 = vmatpush.msrb.mxu3 %v72_v8 }
  0x8e   :  { %368 = vmatmul.msk.f32.vlgmr.msra.gmra.mxu2 %vm75_vm2, %v74_v6 }
 0x103   :  { %v99_v9 = vpop.f32.mrf.mxu1 }
 0x104   :  { %v126_v10 = vsel %vm125_vm3, %v99_v9, -inf }
 0x105   :  { %127 = vmax.xlane.f32.xlu0 %v126_v10  ;;  %v293_v10 = vld [vmem:[%s560_s7 + $0x38] sm:$0xff] }
 0x106   :  { %314 = vmatpush.msrb.mxu0 %v293_v10 }
 0x111   :  { %v122_v11 = vpop.f32.mrf.mxu2 }
 0x112   :  { %v129_v12 = vsel %vm125_vm3, %v122_v11, -inf }
 0x113   :  { %130 = vmax.xlane.f32.xlu0 %v129_v12  ;;  %v291_v12 = vld [vmem:[%s560_s7 + $0x28] sm:$0xff] }
 0x178   :  { %v128_v13 = vpop.xlane.xlu0 %127 }
 0x179   :  { %v132_v14 = vsub.f32 %v99_v9, %v128_v13  ;;  %v290_v13 = vld [vmem:[%s560_s7 + $0x20] sm:$0xff] }
 0x17b   :  { %v134_v15 = vmul.f32 1.442695, %v132_v14  ;;  %v289_v14 = vld [vmem:[%s560_s7 + $0x18] sm:$0xff] }
 0x17d   :  { %381 = vpow2.f32 %v134_v15 }
 0x183   :  { %v382_v16 = vpop.eup %381 }
 0x184   :  { %v138_v17 = vsel %vm125_vm3, %v382_v16, 0.0 }
 0x185   :  { %139 = vadd.xlane.f32.xlu1 %v138_v17 }
 0x186   :  { %v131_v18 = vpop.xlane.xlu0 %130 }
 0x187   :  { %v133_v19 = vsub.f32 %v122_v11, %v131_v18  ;;  %v292_v11 = vld [vmem:[%s560_s7 + $0x30] sm:$0xff]  ;;  %v287_v18 = vld [vmem:[%s560_s7 + $0x8] sm:$0xff] }
 0x188   :  { %315 = vmatpush.msrb.mxu0 %v292_v11 }
 0x189   :  { %v136_v20 = vmul.f32 1.442695, %v133_v19 }
 0x18a   :  { %316 = vmatpush.msrb.mxu0 %v291_v12 }
 0x18b   :  { %383 = vpow2.f32 %v136_v20 }
 0x18c   :  { %317 = vmatpush.msrb.mxu0 %v290_v13 }
 0x18e   :  { %318 = vmatpush.msrb.mxu0 %v289_v14 }
 0x191   :  { %v384_v21 = vpop.eup %383 }
 0x192   :  { %v141_v22 = vsel %vm125_vm3, %v384_v21, 0.0 }
 0x193   :  { %142 = vadd.xlane.f32.xlu1 %v141_v22  ;;  %v286_v22 = vld [vmem:[%s560_s7] sm:$0xff] }
 0x1f8   :  { %v140_v23 = vpop.xlane.xlu1 %139 }
 0x1f9   :  { %385 = vrcp.f32 %v140_v23  ;;  %v155_v27 = vand.u32 2147483648, %v140_v23  ;;  %v153_v29 = vand.u32 2147483647, %v140_v23  ;;  %vm149_vm5 = vweird.f32 %v140_v23 }
 0x1fb   :  { %v156_v32 = vor.u32 1.1754944e-38, %v155_v27  ;;  %vm154_vm7 = vcmp.eq.f32.partialorder %v153_v29, 8.507059e+37  ;;  %v378_v27 = vld [vmem:[%s558_s5] ss:$0 sm:$0xff]  ;;  %s422_s5 = smov 16  }
 0x1ff   :  { %v386_v24 = vpop.eup %385 }
 0x200   :  { %v145_v25 = vmul.f32 %v386_v24, %v140_v23  ;;  %vm150_vm4 = vweird.f32 %v386_v24 }
 0x201   :  { %vm151_vm6 = vmor %vm149_vm5, %vm150_vm4 }
 0x202   :  { %v146_v26 = vsub.f32 1.0, %v145_v25 }
 0x204   :  { %v147_v28 = vmul.f32 %v386_v24, %v146_v26 }
 0x206   :  { %v143_v30 = vpop.xlane.xlu1 %142  ;;  %v148_v31 = vadd.f32 %v386_v24, %v147_v28 }
 0x207   :  { %387 = vrcp.f32 %v143_v30  ;;  %v170_v39 = vand.u32 2147483648, %v143_v30  ;;  %v168_v41 = vand.u32 2147483647, %v143_v30  ;;  %vm164_vm10 = vweird.f32 %v143_v30 }
 0x208   :  { %v152_v33 = vsel %vm151_vm6, %v386_v24, %v148_v31  ;;  %389 = vrcp.f32 %v421_v54  ;;  %vm333_vm6 = vcmask 89088  }
 0x209   :  { %v157_v34 = vsel %vm154_vm7, %v156_v32, %v152_v33  ;;  %v171_v43 = vor.u32 1.1754944e-38, %v170_v39  ;;  %vm169_vm12 = vcmp.eq.f32.partialorder %v168_v41, 8.507059e+37  ;;  %vm335_vm7 = vcmask 130048  }
 0x20a   :  { %v499_v35 = vmul.f32 %v382_v16, %v157_v34  ;;  %v288_v16 = vld [vmem:[%s560_s7 + $0x10] sm:$0xff] }
 0x20b   :  { %319 = vmatpush.msrb.mxu0 %v288_v16 }
 0x20c   :  { %369 = vmatmul.msk.f32.vlgmr.msra.gmra.mxu3 %vm175_vm8, %v499_v35 }
 0x20d   :  { %v388_v36 = vpop.eup %387  ;;  %320 = vmatpush.msrb.mxu0 %v287_v18 }
 0x20e   :  { %v160_v37 = vmul.f32 %v388_v36, %v143_v30  ;;  %vm165_vm9 = vweird.f32 %v388_v36  ;;  %v390_v55 = vpop.eup %389  ;;  %v379_v30 = vld [vmem:[%s559_s6] ss:$0 sm:$0xff] }
 0x20f   :  { %vm166_vm11 = vmor %vm164_vm10, %vm165_vm9  ;;  %v232_v56 = vmul.f32 64.0, %v390_v55  ;;  %vm236_vm14 = vweird.f32 %v390_v55  ;;  %321 = vmatpush.msrb.mxu0 %v286_v22 }
 0x210   :  { %v161_v38 = vsub.f32 1.0, %v160_v37 }
 0x211   :  { %v233_v57 = vsub.f32 1.0, %v232_v56 }
 0x212   :  { %v162_v40 = vmul.f32 %v388_v36, %v161_v38 }
 0x213   :  { %v234_v58 = vmul.f32 %v390_v55, %v233_v57 }
 0x214   :  { %v163_v42 = vadd.f32 %v388_v36, %v162_v40 }
 0x215   :  { %v235_v59 = vadd.f32 %v390_v55, %v234_v58 }
 0x216   :  { %v167_v44 = vsel %vm166_vm11, %v388_v36, %v163_v42 }
 0x217   :  { %v172_v45 = vsel %vm169_vm12, %v171_v43, %v167_v44  ;;  %v237_v60 = vsel %vm236_vm14, %v390_v55, %v235_v59 }
 0x218   :  { %v503_v46 = vmul.f32 %v384_v21, %v172_v45 }
 0x21a   :  { %370 = vmatmul.msk.f32.vlgmr.msrb.gmra.mxu3 %vm175_vm8, %v503_v46  ;;  %vm337_vm8 = vcmask 195584  }
 0x28f   :  { %v196_v48 = vpop.f32.mrf.mxu3 }
 0x290   :  { %v197_v49 = vadd.f32 %v196_v48, %v174_v47 }
 0x292   :  { %v225_v50 = vsel %vm224_vm13, %v197_v49, 0.0 }
 0x293   :  { %226 = vadd.xlane.f32.xlu2 %v225_v50 }
 0x29d   :  { %v219_v51 = vpop.f32.mrf.mxu3 }
 0x29e   :  { %v220_v52 = vadd.f32 %v219_v51, %v174_v47  ;;  %v380_v47 = vld [vmem:[%s561_s8] ss:$0 sm:$0xff]  ;;  %s424_s8 = smov 64  }
 0x2a0   :  { %v228_v53 = vsel %vm224_vm13, %v220_v52, 0.0 }
 0x2a1   :  { %229 = vadd.xlane.f32.xlu2 %v228_v53 }
 0x306   :  { %v227_v61 = vpop.xlane.xlu2 %226 }
 0x307   :  { %v238_v62 = vmul.f32 %v237_v60, %v227_v61 }
 0x309   :  { %v240_v63 = vsub.f32 %v197_v49, %v238_v62 }
 0x30b   :  { %v242_v0 = vmul.f32 %v240_v63, %v240_v63 }
 0x30d   :  { %v244_v1 = vsel %vm224_vm13, %v242_v0, 0.0 }
 0x30e   :  { %245 = vadd.xlane.f32.xlu0 %v244_v1 }
 0x314   :  { %v230_v2 = vpop.xlane.xlu2 %229 }
 0x315   :  { %v239_v3 = vmul.f32 %v237_v60, %v230_v2 }
 0x317   :  { %v241_v4 = vsub.f32 %v220_v52, %v239_v3 }
 0x319   :  { %v243_v5 = vmul.f32 %v241_v4, %v241_v4 }
 0x31b   :  { %v247_v6 = vsel %vm224_vm13, %v243_v5, 0.0 }
 0x31c   :  { %248 = vadd.xlane.f32.xlu1 %v247_v6 }
 0x381   :  { %v246_v7 = vpop.xlane.xlu0 %245 }
 0x382   :  { %v250_v8 = vmul.f32 %v246_v7, %v237_v60 }
 0x384   :  { %v252_v9 = vadd.f32 1e-05, %v250_v8 }
 0x386   :  { %391 = vrsqrt.f32 %v252_v9  ;;  %vm260_vm0 = vweird.f32 %v252_v9 }
 0x38c   :  { %v392_v15 = vpop.eup %391 }
 0x38d   :  { %v255_v17 = vmul.f32 %v392_v15, %v252_v9  ;;  %vm261_vm15 = vweird.f32 %v392_v15 }
 0x38e   :  { %vm262_vm1 = vmor %vm260_vm0, %vm261_vm15 }
 0x38f   :  { %v256_v19 = vmul.f32 %v392_v15, %v255_v17  ;;  %v249_v20 = vpop.xlane.xlu1 %248 }
 0x390   :  { %v251_v21 = vmul.f32 %v249_v20, %v237_v60 }
 0x391   :  { %v257_v23 = vmul.f32 0.5, %v256_v19 }
 0x392   :  { %v253_v24 = vadd.f32 1e-05, %v251_v21 }
 0x393   :  { %v258_v25 = vsub.f32 1.5, %v257_v23 }
 0x394   :  { %393 = vrsqrt.f32 %v253_v24  ;;  %vm270_vm4 = vweird.f32 %v253_v24 }
 0x395   :  { %v259_v26 = vmul.f32 %v392_v15, %v258_v25 }
 0x397   :  { %v263_v28 = vsel %vm262_vm1, %v392_v15, %v259_v26 }
 0x398   :  { %v274_v29 = vmul.f32 %v263_v28, %v240_v63 }
 0x39a   :  { %v394_v31 = vpop.eup %393  ;;  %v279_v32 = vmul.f32 %v378_v27, %v274_v29 }
 0x39b   :  { %v265_v33 = vmul.f32 %v394_v31, %v253_v24  ;;  %vm271_vm3 = vweird.f32 %v394_v31 }
 0x39c   :  { %v284_v34 = vadd.f32 %v379_v30, %v279_v32  ;;  %vm272_vm5 = vmor %vm270_vm4, %vm271_vm3 }
 0x39d   :  { %v266_v36 = vmul.f32 %v394_v31, %v265_v33 }
 0x39e   :  { %300 = vst [vmem:[#allocation1] ss:$2 sm:$0xff] %v284_v34 }
 0x39f   :  { %v267_v37 = vmul.f32 0.5, %v266_v36 }
 0x3a1   :  { %v268_v38 = vsub.f32 1.5, %v267_v37 }
 0x3a3   :  { %v269_v39 = vmul.f32 %v394_v31, %v268_v38 }
 0x3a5   :  { %v273_v40 = vsel %vm272_vm5, %v394_v31, %v269_v39 }
 0x3a6   :  { %v275_v41 = vmul.f32 %v273_v40, %v241_v4 }
 0x3a8   :  { %v280_v42 = vmul.f32 %v378_v27, %v275_v41 }
 0x3aa   :  { %v285_v43 = vadd.f32 %v379_v30, %v280_v42 }
 0x3ac   :  { %302 = vst [vmem:[#allocation1 + $0x1] ss:$2 sm:$0xff] %v285_v43 }
 0x3b3   :  { %v303_v44 = vld.sshfl [vmem:[#allocation1] sm:$0xff pattern:$0x75316420] }
 0x3b4   :  { %371 = vmatmul.msk.f32.vlgmr.msrb.gmra.mxu0 %vm75_vm2, %v303_v44  ;;  %326 = vst [vmem:[#allocation1] ss:$2 sm:$0xff] %v499_v35 }
 0x3b5   :  { %328 = vst [vmem:[#allocation1 + $0x1] ss:$2 sm:$0xff] %v503_v46 }
 0x3bc   :  { %v329_v45 = vld.sshfl [vmem:[#allocation1] sm:$0xff pattern:$0x75316420] }
 0x3bd   :  { %330 = vrot.lane.b32.xlu2 %v329_v45, %s422_s5 }
 0x417   :  { %v331_v35 = vpop.permute.xlu2 %330 }
 0x431   :  { %v323_v48 = vpop.f32.mrf.mxu0 }
 0x432   :  { %v324_v49 = vadd.f32 %v380_v47, %v323_v48 }
 0x434   :  { %v334_v46 = vsel %vm333_vm6, %v324_v49, 0.0 }
 0x435   :  { %v336_v50 = vsel %vm335_vm7, %v334_v46, %v331_v35 }
 0x436   :  { %v338_v51 = vsel %vm337_vm8, %v336_v50, 0.0 }
 0x437   :  { %v340_v52 = vrot.slane %v338_v51, 4  ;;  %342 = vst [vmem:[#allocation2] sm:$0xf] %v338_v51 }
 0x439   :  { %343 = vst [vmem:[#allocation2 + $0x4] sm:$0xf] %v340_v52 }
 0x43a   :  { %356 = dma.vmem_to_hbm [thread:$0]  %s349_s16, 128, %s351_s0, [#allocation3], %s424_s8, %s424_s8, %s425_s2  }
 0x43b   :  { %419 = dma.done.wait [#allocation3], 128  }
 0x43c   :  { %420 = vsyncadd [#allocation3], 4294967168 }
 0x43d   :  { %361 = vsyncpa [#allocation3], 1 }

</bundles_post_ra>
